<compile_context>
chip_gen: v7x
topology: tpu7x:2x2x1
jax: 0.10.0
libtpu: 0.0.40
codegen_flags: <defaults>
</compile_context>

<pallas_src>
import math
from functools import partial

import jax
import jax.numpy as jnp
from jax.experimental import pallas as pl
from jax.experimental.pallas import tpu as pltpu


def _plan_rows(M, TH, B, *, act_bytes=2, act_budget=24 << 20, target_rows=2048):
    """Lane width (lcm(128, B)) and row-tile size for the (M, TH) streams."""
    lane_w = 128 * B // math.gcd(128, B)            # batch divides lane_w
    per_row = 2 * 2 * TH * act_bytes                # h + z, double-buffered, bf16
    budget_rows = max(lane_w, (act_budget // per_row) // lane_w * lane_w)
    tgt = max(lane_w, (target_rows // lane_w) * lane_w)
    need_rows = pl.cdiv(M, lane_w) * lane_w         # rows after padding M up
    mt = max(lane_w, min(budget_rows, tgt, need_rows))
    return lane_w, mt


def _dual_attention_kernel(h_ref, z_ref, w_ref, b_ref, wv_ref, out_ref, *,
                           batch, total_rows, stack_lhs):
    i = pl.program_id(0)
    mt, th = h_ref.shape
    n_rows, w_lanes = out_ref.shape                  # lane-dense u staging block
    v_dim = wv_ref.shape[1]
    rt = mt // w_lanes                               # staging rows per tile

    # ---- streaming body: fused projection for this row tile -----------------
    if stack_lhs:
        # TH < 128: lane-concat in VMEM -> one dot at full contraction depth.
        x = jnp.concatenate([h_ref[...], z_ref[...]], axis=-1)      # (mt, 2*TH)
        s = jnp.dot(x, w_ref[...], preferred_element_type=jnp.float32)
    else:
        s = (jnp.dot(h_ref[...], w_ref[pl.ds(0, th), :],
                     preferred_element_type=jnp.float32)
             + jnp.dot(z_ref[...], w_ref[pl.ds(th, th), :],
                       preferred_element_type=jnp.float32))
    s = s + b_ref[...]                               # folded bias (f32)
    t = jnp.tanh(s)                                  # (mt, V) f32

    # u[m] = sum_j tanh(s)[m, j] * wv[j], laid out lane-dense: row-major flat
    # index m = (i*rt + r)*w_lanes + lane.
    t3 = t.reshape(rt, w_lanes, v_dim)               # free re-tiling of rows
    u_rows = jnp.sum(t3 * wv_ref[...], axis=-1)      # (rt, w_lanes) f32

    start = i * rt
    if rt > 1:
        start = pl.multiple_of(start, rt)
    out_ref[pl.ds(start, rt), :] = u_rows            # unmasked, full-lane store

    # ---- epilogue: per-batch softmax over the sequence axis -----------------
    @pl.when(i == pl.num_programs(0) - 1)
    def _finalize():
        neg = jnp.finfo(jnp.float32).min
        x_all = out_ref[...]                                          # (R, W)
        r_idx = jax.lax.broadcasted_iota(jnp.int32, (n_rows, w_lanes), 0)
        l_idx = jax.lax.broadcasted_iota(jnp.int32, (n_rows, w_lanes), 1)
        valid = (r_idx * w_lanes + l_idx) < total_rows                # pad mask

        # Element with flat index m belongs to batch m % B; since B | w_lanes
        # this is lane % B, identical for every staging row of a lane.
        xm = jnp.where(valid, x_all, neg)
        col_max = jnp.max(xm, axis=0, keepdims=True)                  # (1, W)

        cls = (jax.lax.broadcasted_iota(jnp.int32, (batch, w_lanes), 1) % batch
               == jax.lax.broadcasted_iota(jnp.int32, (batch, w_lanes), 0))
        cmax = jnp.max(jnp.where(cls, col_max, neg), axis=1, keepdims=True)
        lane_max = jnp.sum(jnp.where(cls, cmax, 0.0), axis=0, keepdims=True)

        e = jnp.where(valid, jnp.exp(x_all - lane_max), 0.0)          # (R, W)
        col_sum = jnp.sum(e, axis=0, keepdims=True)                   # (1, W)
        csum = jnp.sum(jnp.where(cls, col_sum, 0.0), axis=1, keepdims=True)
        lane_sum = jnp.sum(jnp.where(cls, csum, 0.0), axis=0, keepdims=True)

        out_ref[...] = e * pl.reciprocal(lane_sum, approx=False)


def dual_attention(hidden, z, Ww, bw, Wz, bz, Wv, bv, w_a, alpha_s):
    """hidden, z: (S, B, 2*hidden_dim) float32.  Returns attention (S, B, 1)."""
    S, B, TH = hidden.shape
    V = Ww.shape[1]
    M = S * B

    lane_w, mt = _plan_rows(M, TH, B)
    grid_m = pl.cdiv(M, mt)
    m_pad = grid_m * mt
    n_rows = m_pad // lane_w                  # rows of the lane-dense u block
    stack_lhs = TH < 128

    # Free contiguous reshape (no transposes): flat row index = s*B + b.
    h2 = hidden.reshape(M, TH)
    z2 = z.reshape(M, TH)
    if m_pad != M:
        # Zero pad the tail tile; fused into the bf16 cast below under jit.
        h2 = jnp.pad(h2, ((0, m_pad - M), (0, 0)))
        z2 = jnp.pad(z2, ((0, m_pad - M), (0, 0)))
    h2 = h2.astype(jnp.bfloat16)
    z2 = z2.astype(jnp.bfloat16)

    # Stacked weight [Ww; Wz] (bf16), folded pre-tanh bias (f32), v weight row.
    w_cat = jnp.concatenate([Ww, Wz], axis=0).astype(jnp.bfloat16)    # (2TH, V)
    wa_term = jnp.asarray(w_a, jnp.float32) * jnp.asarray(alpha_s, jnp.float32)
    b_total = (bw.reshape(-1).astype(jnp.float32)
               + bz.reshape(-1).astype(jnp.float32) + wa_term).reshape(1, V)
    wv_row = Wv.reshape(1, V).astype(jnp.float32)
    # bv is added uniformly along the softmax axis (dim 0) after tanh, so it
    # cannot change the returned attention (softmax shift invariance).
    del bv

    # Explicit VMEM sizing (review: set the scoped limit from the budget).
    need = (2 * 2 * mt * TH * 2            # double-buffered bf16 h/z tiles
            + 2 * 2 * TH * V * 2           # double-buffered bf16 stacked weight
            + 2 * n_rows * lane_w * 4      # resident lane-dense u/output block
            + (2 << 20))                   # bias / wv / temporaries slack
    vmem_limit = int(min(max(need + (8 << 20), 32 << 20), 96 << 20))

    cost = pl.CostEstimate(
        flops=4 * M * TH * V,
        transcendentals=M * (V + 1),
        bytes_accessed=2 * M * TH * 2 + 2 * TH * V * 2 + m_pad * 4)

    out = pl.pallas_call(
        partial(_dual_attention_kernel, batch=B, total_rows=M,
                stack_lhs=stack_lhs),
        out_shape=jax.ShapeDtypeStruct((n_rows, lane_w), jnp.float32),
        grid=(grid_m,),
        in_specs=[
            pl.BlockSpec((mt, TH), lambda i: (i, 0)),        # hidden rows (bf16)
            pl.BlockSpec((mt, TH), lambda i: (i, 0)),        # z rows (bf16)
            pl.BlockSpec((2 * TH, V), lambda i: (0, 0)),     # stacked [Ww; Wz]
            pl.BlockSpec((1, V), lambda i: (0, 0)),          # folded bias
            pl.BlockSpec((1, V), lambda i: (0, 0)),          # v weight row
        ],
        # Lane-dense output block doubles as the u staging buffer; it stays
        # resident across all grid steps and is finalized in the last step.
        out_specs=pl.BlockSpec((n_rows, lane_w), lambda i: (0, 0)),
        compiler_params=pltpu.CompilerParams(
            dimension_semantics=("arbitrary",),
            vmem_limit_bytes=vmem_limit),
        cost_estimate=cost,
    )(h2, z2, w_cat, b_total, wv_row)

    # Flat rows are in s-major order (m = s*B + b) -> (S, B, 1).
    return out.reshape(-1)[:M].reshape(S, B, 1)


if __name__ == "__main__":
    S, B = 8, 2                 # seq, batch
    hidden_dim, v_dim = 32, 16
    TH = 2 * hidden_dim
    alpha_s = 0.5

    key = jax.random.PRNGKey(0)
    ks = jax.random.split(key, 8)

    # deterministic nn.Linear-style init: U(-1/sqrt(fan_in), 1/sqrt(fan_in))
    kw = 1.0 / float(TH) ** 0.5
    kv = 1.0 / float(v_dim) ** 0.5
    Ww = jax.random.uniform(ks[0], (TH, v_dim), jnp.float32, -kw, kw)
    bw = jax.random.uniform(ks[1], (v_dim,), jnp.float32, -kw, kw)
    Wz = jax.random.uniform(ks[2], (TH, v_dim), jnp.float32, -kw, kw)
    bz = jax.random.uniform(ks[3], (v_dim,), jnp.float32, -kw, kw)
    Wv = jax.random.uniform(ks[4], (1, v_dim), jnp.float32, -kv, kv)
    bv = jax.random.uniform(ks[5], (1,), jnp.float32, -kv, kv)
    w_a = jnp.zeros((), jnp.float32)        # nn.Parameter(torch.tensor(0))

    hidden = jax.random.normal(ks[6], (S, B, TH), jnp.float32)
    z = jax.random.normal(ks[7], (S, B, TH), jnp.float32)

    att = jax.jit(dual_attention)(hidden, z, Ww, bw, Wz, bz, Wv, bv, w_a,
                                  alpha_s)
    att = jax.block_until_ready(att)

    # pure-JAX f32 reference for the same forward semantics
    sum_w_ref = hidden @ Ww + bw + z @ Wz + bz + w_a * alpha_s
    u_ref = jnp.tanh(sum_w_ref) @ Wv.T + bv            # (S, B, 1)
    att_ref = jax.nn.softmax(u_ref, axis=0)

    assert att.shape == (S, B, 1)
    # columns are proper distributions (exact reciprocal in the kernel)
    assert jnp.allclose(att.sum(axis=0), 1.0, atol=1e-4)
    # bf16 activation/weight streaming -> modest tolerance vs the f32 reference
    assert jnp.allclose(att, att_ref, atol=1e-2, rtol=1e-2), (
        float(jnp.max(jnp.abs(att - att_ref))))
    print("KERNEL_OK")
</pallas_src>

<mosaic_0001>
module attributes {stable_mosaic.version = 11 : i64} {
  func.func @_dual_attention_kernel(%arg0: i32, %arg1: memref<128x64xbf16, #tpu.memory_space<vmem>>, %arg2: memref<128x64xbf16, #tpu.memory_space<vmem>>, %arg3: memref<128x16xbf16, #tpu.memory_space<vmem>>, %arg4: memref<1x16xf32, #tpu.memory_space<vmem>>, %arg5: memref<1x16xf32, #tpu.memory_space<vmem>>, %arg6: memref<1x128xf32, #tpu.memory_space<vmem>>) attributes {dimension_semantics = [#tpu.dimension_semantics<arbitrary>], iteration_bounds = array<i64: 1>, scalar_prefetch = 0 : i64, scratch_operands = 0 : i64, tpu.core_type = #tpu.core_type<tc>, window_params = [{transform_indices = @transform_0, window_bounds = array<i64: 128, 64>}, {transform_indices = @transform_1, window_bounds = array<i64: 128, 64>}, {pipeline_mode = #tpu.pipeline_mode<synchronous>, transform_indices = @transform_2, window_bounds = array<i64: 128, 16>}, {pipeline_mode = #tpu.pipeline_mode<synchronous>, transform_indices = @transform_3, window_bounds = array<i64: 1, 16>}, {pipeline_mode = #tpu.pipeline_mode<synchronous>, transform_indices = @transform_4, window_bounds = array<i64: 1, 16>}, {pipeline_mode = #tpu.pipeline_mode<synchronous>, transform_indices = @transform_5, window_bounds = array<i64: 1, 128>}]} {
    %c0 = arith.constant 0 : index
    %c0_0 = arith.constant 0 : index
    %0 = vector.load %arg1[%c0, %c0_0] : memref<128x64xbf16, #tpu.memory_space<vmem>>, vector<128x64xbf16>
    %c0_1 = arith.constant 0 : index
    %c0_2 = arith.constant 0 : index
    %1 = vector.load %arg2[%c0_1, %c0_2] : memref<128x64xbf16, #tpu.memory_space<vmem>>, vector<128x64xbf16>
    %2 = tpu.concatenate %0, %1 in 1 : vector<128x64xbf16>, vector<128x64xbf16> -> vector<128x128xbf16>
    %c0_3 = arith.constant 0 : index
    %c0_4 = arith.constant 0 : index
    %3 = vector.load %arg3[%c0_3, %c0_4] : memref<128x16xbf16, #tpu.memory_space<vmem>>, vector<128x16xbf16>
    %cst = arith.constant dense<0.000000e+00> : vector<128x16xf32>
    %4 = tpu.matmul %2, %3, %cst {dimension_numbers = #tpu.dot_dimension_numbers<[1], [0], [0], [1], [0, 0, 1, 1], [], []>} : vector<128x128xbf16>, vector<128x16xbf16>, vector<128x16xf32> -> vector<128x16xf32>
    %c0_5 = arith.constant 0 : index
    %c0_6 = arith.constant 0 : index
    %5 = vector.load %arg4[%c0_5, %c0_6] : memref<1x16xf32, #tpu.memory_space<vmem>>, vector<1x16xf32>
    %6 = vector.broadcast %5 : vector<1x16xf32> to vector<128x16xf32>
    %7 = arith.addf %4, %6 : vector<128x16xf32>
    %8 = math.tanh %7 : vector<128x16xf32>
    %9 = vector.shape_cast %8 : vector<128x16xf32> to vector<1x128x16xf32>
    %c0_7 = arith.constant 0 : index
    %c0_8 = arith.constant 0 : index
    %10 = vector.load %arg5[%c0_7, %c0_8] : memref<1x16xf32, #tpu.memory_space<vmem>>, vector<1x16xf32>
    %11 = vector.shape_cast %10 : vector<1x16xf32> to vector<1x1x16xf32>
    %12 = vector.broadcast %11 : vector<1x1x16xf32> to vector<1x128x16xf32>
    %13 = arith.mulf %9, %12 : vector<1x128x16xf32>
    %cst_9 = arith.constant dense<0.000000e+00> : vector<1x128xf32>
    %14 = vector.multi_reduction <add>, %13, %cst_9 [2] : vector<1x128x16xf32> to vector<1x128xf32>
    %c1_i32 = arith.constant 1 : i32
    %15 = arith.muli %arg0, %c1_i32 : i32
    %16 = arith.index_cast %15 : i32 to index
    %c0_10 = arith.constant 0 : index
    %17 = vector.load %arg6[%16, %c0_10] : memref<1x128xf32, #tpu.memory_space<vmem>>, vector<1x128xf32>
    tpu.vector_store %arg6[%16, %c0_10], %14 {strides = array<i32>} : memref<1x128xf32, #tpu.memory_space<vmem>>, vector<1x128xf32>,
    %c0_i32 = arith.constant 0 : i32
    %18 = arith.cmpi eq, %arg0, %c0_i32 : i32
    %19 = arith.extui %18 : i1 to i32
    %c0_i32_11 = arith.constant 0 : i32
    %20 = arith.cmpi ne, %19, %c0_i32_11 : i32
    scf.if %20 {
      %c0_12 = arith.constant 0 : index
      %c0_13 = arith.constant 0 : index
      %21 = vector.load %arg6[%c0_12, %c0_13] : memref<1x128xf32, #tpu.memory_space<vmem>>, vector<1x128xf32>
      %22 = tpu.iota {dimensions = array<i32: 0>} : vector<1x128xi32>
      %23 = tpu.iota {dimensions = array<i32: 1>} : vector<1x128xi32>
      %c128_i32 = arith.constant 128 : i32
      %24 = vector.broadcast %c128_i32 : i32 to vector<1x128xi32>
      %25 = arith.muli %22, %24 : vector<1x128xi32>
      %26 = arith.addi %25, %23 : vector<1x128xi32>
      %c16_i32 = arith.constant 16 : i32
      %27 = vector.broadcast %c16_i32 : i32 to vector<1x128xi32>
      %28 = arith.cmpi slt, %26, %27 : vector<1x128xi32>
      %cst_14 = arith.constant -3.40282347E+38 : f32
      %29 = vector.broadcast %cst_14 : f32 to vector<1x128xf32>
      %30 = arith.select %28, %21, %29 : vector<1x128xi1>, vector<1x128xf32>
      %cst_15 = arith.constant dense<0xFF800000> : vector<128xf32>
      %31 = vector.multi_reduction <maximumf>, %30, %cst_15 [0] : vector<1x128xf32> to vector<128xf32>
      %32 = vector.shape_cast %31 : vector<128xf32> to vector<1x128xf32>
      %33 = tpu.iota {dimensions = array<i32: 1>} : vector<2x128xi32>
      %c2_i32 = arith.constant 2 : i32
      %c0_i32_16 = arith.constant 0 : i32
      %34 = arith.cmpi eq, %c2_i32, %c0_i32_16 : i32
      %c1_i32_17 = arith.constant 1 : i32
      %35 = arith.select %34, %c1_i32_17, %c2_i32 : i32
      %36 = vector.broadcast %35 : i32 to vector<2x128xi32>
      %37 = arith.remsi %33, %36 : vector<2x128xi32>
      %c0_i32_18 = arith.constant 0 : i32
      %38 = vector.broadcast %c0_i32_18 : i32 to vector<2x128xi32>
      %39 = arith.cmpi ne, %37, %38 : vector<2x128xi32>
      %c0_i32_19 = arith.constant 0 : i32
      %40 = vector.broadcast %c0_i32_19 : i32 to vector<2x128xi32>
      %41 = arith.cmpi slt, %37, %40 : vector<2x128xi32>
      %c0_i32_20 = arith.constant 0 : i32
      %42 = arith.cmpi slt, %35, %c0_i32_20 : i32
      %43 = vector.broadcast %42 : i1 to vector<2x128xi1>
      %44 = vector.broadcast %43 : vector<2x128xi1> to vector<2x128xi1>
      %45 = arith.xori %41, %44 : vector<2x128xi1>
      %46 = arith.andi %45, %39 : vector<2x128xi1>
      %47 = vector.broadcast %35 : i32 to vector<2x128xi32>
      %48 = arith.addi %37, %47 : vector<2x128xi32>
      %49 = arith.select %46, %48, %37 : vector<2x128xi1>, vector<2x128xi32>
      %50 = tpu.iota {dimensions = array<i32: 0>} : vector<2x128xi32>
      %51 = arith.cmpi eq, %49, %50 : vector<2x128xi32>
      %cst_21 = arith.constant -3.40282347E+38 : f32
      %52 = vector.shape_cast %32 : vector<1x128xf32> to vector<1x128xf32>
      %53 = vector.broadcast %52 : vector<1x128xf32> to vector<2x128xf32>
      %54 = vector.broadcast %cst_21 : f32 to vector<2x128xf32>
      %55 = arith.select %51, %53, %54 : vector<2x128xi1>, vector<2x128xf32>
      %cst_22 = arith.constant dense<0xFF800000> : vector<2xf32>
      %56 = vector.multi_reduction <maximumf>, %55, %cst_22 [1] : vector<2x128xf32> to vector<2xf32>
      %57 = vector.shape_cast %56 : vector<2xf32> to vector<2x1xf32>
      %cst_23 = arith.constant 0.000000e+00 : f32
      %58 = vector.shape_cast %57 : vector<2x1xf32> to vector<2x1xf32>
      %59 = vector.broadcast %58 : vector<2x1xf32> to vector<2x128xf32>
      %60 = vector.broadcast %cst_23 : f32 to vector<2x128xf32>
      %61 = arith.select %51, %59, %60 : vector<2x128xi1>, vector<2x128xf32>
      %cst_24 = arith.constant dense<0.000000e+00> : vector<128xf32>
      %62 = vector.multi_reduction <add>, %61, %cst_24 [0] : vector<2x128xf32> to vector<128xf32>
      %63 = vector.shape_cast %62 : vector<128xf32> to vector<1x128xf32>
      %64 = arith.subf %21, %63 : vector<1x128xf32>
      %65 = math.exp %64 : vector<1x128xf32>
      %cst_25 = arith.constant 0.000000e+00 : f32
      %66 = vector.broadcast %cst_25 : f32 to vector<1x128xf32>
      %67 = arith.select %28, %65, %66 : vector<1x128xi1>, vector<1x128xf32>
      %cst_26 = arith.constant dense<0.000000e+00> : vector<128xf32>
      %68 = vector.multi_reduction <add>, %67, %cst_26 [0] : vector<1x128xf32> to vector<128xf32>
      %69 = vector.shape_cast %68 : vector<128xf32> to vector<1x128xf32>
      %cst_27 = arith.constant 0.000000e+00 : f32
      %70 = vector.shape_cast %69 : vector<1x128xf32> to vector<1x128xf32>
      %71 = vector.broadcast %70 : vector<1x128xf32> to vector<2x128xf32>
      %72 = vector.broadcast %cst_27 : f32 to vector<2x128xf32>
      %73 = arith.select %51, %71, %72 : vector<2x128xi1>, vector<2x128xf32>
      %cst_28 = arith.constant dense<0.000000e+00> : vector<2xf32>
      %74 = vector.multi_reduction <add>, %73, %cst_28 [1] : vector<2x128xf32> to vector<2xf32>
      %75 = vector.shape_cast %74 : vector<2xf32> to vector<2x1xf32>
      %cst_29 = arith.constant 0.000000e+00 : f32
      %76 = vector.shape_cast %75 : vector<2x1xf32> to vector<2x1xf32>
      %77 = vector.broadcast %76 : vector<2x1xf32> to vector<2x128xf32>
      %78 = vector.broadcast %cst_29 : f32 to vector<2x128xf32>
      %79 = arith.select %51, %77, %78 : vector<2x128xi1>, vector<2x128xf32>
      %cst_30 = arith.constant dense<0.000000e+00> : vector<128xf32>
      %80 = vector.multi_reduction <add>, %79, %cst_30 [0] : vector<2x128xf32> to vector<128xf32>
      %81 = vector.shape_cast %80 : vector<128xf32> to vector<1x128xf32>
      %82 = tpu.reciprocal %81 : vector<1x128xf32> -> vector<1x128xf32>
      %83 = arith.mulf %67, %82 : vector<1x128xf32>
      %c0_31 = arith.constant 0 : index
      %c0_32 = arith.constant 0 : index
      %84 = vector.load %arg6[%c0_31, %c0_32] : memref<1x128xf32, #tpu.memory_space<vmem>>, vector<1x128xf32>
      tpu.vector_store %arg6[%c0_31, %c0_32], %83 {strides = array<i32>} : memref<1x128xf32, #tpu.memory_space<vmem>>, vector<1x128xf32>,
    } else {
    }
    return
  }
  func.func @transform_0(%arg0: i32) -> (i32, i32) {
    %c0_i32 = arith.constant 0 : i32
    %c0_i32_0 = arith.constant 0 : i32
    return %arg0, %c0_i32 : i32, i32
  }
  func.func @transform_1(%arg0: i32) -> (i32, i32) {
    %c0_i32 = arith.constant 0 : i32
    %c0_i32_0 = arith.constant 0 : i32
    return %arg0, %c0_i32 : i32, i32
  }
  func.func @transform_2(%arg0: i32) -> (i32, i32) {
    %c0_i32 = arith.constant 0 : i32
    %c0_i32_0 = arith.constant 0 : i32
    %c0_i32_1 = arith.constant 0 : i32
    return %c0_i32, %c0_i32_0 : i32, i32
  }
  func.func @transform_3(%arg0: i32) -> (i32, i32) {
    %c0_i32 = arith.constant 0 : i32
    %c0_i32_0 = arith.constant 0 : i32
    %c0_i32_1 = arith.constant 0 : i32
    return %c0_i32, %c0_i32_0 : i32, i32
  }
  func.func @transform_4(%arg0: i32) -> (i32, i32) {
    %c0_i32 = arith.constant 0 : i32
    %c0_i32_0 = arith.constant 0 : i32
    %c0_i32_1 = arith.constant 0 : i32
    return %c0_i32, %c0_i32_0 : i32, i32
  }
  func.func @transform_5(%arg0: i32) -> (i32, i32) {
    %c0_i32 = arith.constant 0 : i32
    %c0_i32_0 = arith.constant 0 : i32
    %c0_i32_1 = arith.constant 0 : i32
    return %c0_i32, %c0_i32_0 : i32, i32
  }
}

</mosaic_0001>

<bundles_post_ra>
// kernel: dual_attention.1
= control target key start
LH: loop header
LB: loop body
LE: loop exit
PB: predicated region body
PF: predicated region fallthrough
CT: control target
= control target key end

     0   :  { %s787_s22 = smov 64   ;;  %vm149_vm0 = vcmask 523264   ;;  %vm389_vm1 = vcmask 130048   ;;  %vm465_vm2 = vcmask 130112   ;;  %vm472_vm3 = vcmask 195712   ;;  %s1026_s1 = inlined_call_operand.vmem [shape: bf16[128,64], index: 1, kind: input, shape index: {}]   ;;  %s1027_s2 = inlined_call_operand.vmem [shape: bf16[128,16], index: 2, kind: input, shape index: {}]   ;;  %s1028_s0 = inlined_call_operand.vmem [shape: bf16[128,64], index: 0, kind: input, shape index: {}]   ;;  %s1029_s3 = inlined_call_operand.vmem [shape: f32[1,16], index: 3, kind: input, shape index: {}]   ;;  %s1030_s4 = inlined_call_operand.vmem [shape: f32[1,16], index: 4, kind: input, shape index: {}]   ;;  %s1031_s5 = inlined_call_operand.vmem [shape: f32[1,128], index: 5, kind: output, shape index: {}]  }
   0x1   :  { %v727_v0 = vld [vmem:[%s1026_s1 + $0x10] sm:$0xff]   ;;  %v728_v1 = vld [vmem:[%s1026_s1] sm:$0xff]   ;;  %v730_v3 = vld [vmem:[%s1026_s1 + $0x8] sm:$0xff]   ;;  %vm479_vm4 = vcmask 261312   ;;  %vm486_vm5 = vcmask 326912   ;;  %vm493_vm6 = vcmask 392512  }
   0x2   :  { %137 = vrot.lane.b32.xlu1 %v727_v0, %s787_s22  ;;  %v729_v2 = vld [vmem:[%s1026_s1 + $0x20] sm:$0xff]   ;;  %133 = vrot.lane.b32.xlu0 %v728_v1, %s787_s22  ;;  %v731_v4 = vld [vmem:[%s1026_s1 + $0x28] sm:$0xff]   ;;  %vm500_vm7 = vcmask 458112   ;;  %vm507_vm8 = vcmask 523712   ;;  %vm514_vm9 = vcmask 589312   ;;  %vm521_vm10 = vcmask 654912  }
   0x3   :  { %v732_v5 = vld [vmem:[%s1026_s1 + $0x18] sm:$0xff]   ;;  %v735_v6 = vld [vmem:[%s1027_s2] sm:$0xff]   ;;  %v736_v7 = vld [vmem:[%s1027_s2 + $0x8] sm:$0xff]   ;;  %vm528_vm11 = vcmask 720512   ;;  %vm535_vm12 = vcmask 786112   ;;  %vm542_vm13 = vcmask 851712  }
   0x4   :  { %v734_v8 = vld [vmem:[%s1026_s1 + $0x38] sm:$0xff]   ;;  %678 = vmatprep.subr.bf16.mxu0 %v735_v6  ;;  %v733_v9 = vld [vmem:[%s1026_s1 + $0x30] sm:$0xff]   ;;  %710 = vmatprep.subr.bf16.mxu1 %v735_v6  ;;  %v739_v12 = vld [vmem:[%s1027_s2 + $0x20] sm:$0xff]   ;;  %vm549_vm14 = vcmask 917312   ;;  %vm556_vm15 = vcmask 982912  }
   0x5   :  { %679 = vmatpush3.bf16.msra.mxu0 %v735_v6  ;;  %v737_v10 = vld [vmem:[%s1027_s2 + $0x10] sm:$0xff]   ;;  %718 = vmatpush3.bf16.msra.mxu1 %v735_v6  ;;  %v738_v11 = vld [vmem:[%s1027_s2 + $0x18] sm:$0xff]   ;;  %v740_v13 = vld [vmem:[%s1027_s2 + $0x28] sm:$0xff]  }
   0x6   :  { %141 = vrot.lane.b32.xlu1 %v729_v2, %s787_s22  ;;  %135 = vrot.lane.b32.xlu0 %v730_v3, %s787_s22  ;;  %v741_v14 = vld [vmem:[%s1027_s2 + $0x30] sm:$0xff]   ;;  %v742_v15 = vld [vmem:[%s1027_s2 + $0x38] sm:$0xff]  }
   0x7   :  { %680 = vmatprep.subr.bf16.mxu0 %v736_v7  ;;  %711 = vmatprep.subr.bf16.mxu1 %v736_v7  ;;  %v743_v16 = vld [vmem:[%s1028_s0] sm:$0xff]   ;;  %v744_v21 = vld [vmem:[%s1028_s0 + $0x8] sm:$0xff]   ;;  %v745_v22 = vld [vmem:[%s1028_s0 + $0x10] sm:$0xff]  }
   0x8   :  { %v746_v19 = vld [vmem:[%s1028_s0 + $0x20] sm:$0xff]   ;;  %v747_v26 = vld [vmem:[%s1028_s0 + $0x28] sm:$0xff]   ;;  %v748_v30 = vld [vmem:[%s1028_s0 + $0x18] sm:$0xff]  }
   0x9   :  { %681 = vmatpush3.bf16.msra.mxu0 %v736_v7  ;;  %719 = vmatpush3.bf16.msra.mxu1 %v736_v7  ;;  %v749_v33 = vld [vmem:[%s1028_s0 + $0x30] sm:$0xff]   ;;  %v750_v34 = vld [vmem:[%s1028_s0 + $0x38] sm:$0xff]   ;;  %v901_v40 = vld [vmem:[%s1029_s3] ss:$0 sm:$0xff] }
   0xa   :  { %143 = vrot.lane.b32.xlu1 %v731_v4, %s787_s22  ;;  %139 = vrot.lane.b32.xlu0 %v732_v5, %s787_s22  ;;  %v914_v61 = vld [vmem:[%s1030_s4] ss:$0 sm:$0xff] }
   0xb   :  { %682 = vmatprep.subr.bf16.mxu0 %v737_v10  ;;  %712 = vmatprep.subr.bf16.mxu1 %v737_v10 }
   0xd   :  { %683 = vmatpush3.bf16.msra.mxu0 %v737_v10  ;;  %720 = vmatpush3.bf16.msra.mxu1 %v737_v10 }
   0xe   :  { %147 = vrot.lane.b32.xlu1 %v734_v8, %s787_s22  ;;  %145 = vrot.lane.b32.xlu0 %v733_v9, %s787_s22 }
   0xf   :  { %684 = vmatprep.subr.bf16.mxu0 %v738_v11  ;;  %713 = vmatprep.subr.bf16.mxu1 %v738_v11 }
  0x11   :  { %685 = vmatpush3.bf16.msra.mxu0 %v738_v11  ;;  %721 = vmatpush3.bf16.msra.mxu1 %v738_v11 }
  0x12   :  { %686 = vmatprep.subr.bf16.mxu0 %v739_v12  ;;  %714 = vmatprep.subr.bf16.mxu1 %v739_v12 }
  0x15   :  { %687 = vmatpush3.bf16.msra.mxu0 %v739_v12  ;;  %722 = vmatpush3.bf16.msra.mxu1 %v739_v12 }
  0x16   :  { %688 = vmatprep.subr.bf16.mxu0 %v740_v13  ;;  %715 = vmatprep.subr.bf16.mxu1 %v740_v13 }
  0x19   :  { %689 = vmatpush3.bf16.msra.mxu0 %v740_v13  ;;  %723 = vmatpush3.bf16.msra.mxu1 %v740_v13 }
  0x1a   :  { %690 = vmatprep.subr.bf16.mxu0 %v741_v14  ;;  %716 = vmatprep.subr.bf16.mxu1 %v741_v14 }
  0x1d   :  { %691 = vmatpush3.bf16.msra.mxu0 %v741_v14  ;;  %724 = vmatpush3.bf16.msra.mxu1 %v741_v14 }
  0x1e   :  { %692 = vmatprep.subr.bf16.mxu0 %v742_v15  ;;  %717 = vmatprep.subr.bf16.mxu1 %v742_v15 }
  0x21   :  { %693 = vmatpush3.bf16.msra.mxu0 %v742_v15  ;;  %725 = vmatpush3.bf16.msra.mxu1 %v742_v15 }
  0x74   :  { %v138_v17 = vpop.permute.xlu1 %137  ;;  %v134_v18 = vpop.permute.xlu0 %133 }
  0x75   :  { %v152_v20 = vsel %vm149_vm0, %v743_v16, %v134_v18  ;;  %v160_v28 = vsel %vm149_vm0, %v745_v22, %v138_v17 }
  0x76   :  { %694 = vmatprep.mubr.bf16.mxu0 %v152_v20 }
  0x78   :  { %v142_v23 = vpop.permute.xlu1 %141  ;;  %v136_v24 = vpop.permute.xlu0 %135 }
  0x79   :  { %v168_v25 = vsel %vm149_vm0, %v746_v19, %v142_v23  ;;  %v156_v27 = vsel %vm149_vm0, %v744_v21, %v136_v24 }
  0x7a   :  { %702 = vmatprep.mubr.bf16.mxu1 %v168_v25  ;;  %695 = vmatmul.mubr.bf16.vlgmr.msra.gmra.mrb[0].mxu0 %v156_v27 }
  0x7b   :  { %698 = vmatprep.mubr.bf16.mxu0 %v160_v28 }
  0x7c   :  { %v144_v29 = vpop.permute.xlu1 %143  ;;  %v140_v32 = vpop.permute.xlu0 %139 }
  0x7d   :  { %v172_v31 = vsel %vm149_vm0, %v747_v26, %v144_v29  ;;  %v164_v35 = vsel %vm149_vm0, %v748_v30, %v140_v32 }
  0x7e   :  { %703 = vmatmul.mubr.bf16.vlgmr.msra.gmra.mrb[0].mxu1 %v172_v31 }
  0x80   :  { %v148_v36 = vpop.permute.xlu1 %147  ;;  %v146_v37 = vpop.permute.xlu0 %145 }
  0x81   :  { %v176_v38 = vsel %vm149_vm0, %v749_v33, %v146_v37  ;;  %v180_v39 = vsel %vm149_vm0, %v750_v34, %v148_v36  ;;  %vm563_vm0 = vcmask 1048512  }
  0x82   :  { %699 = vmatmul.mubr.bf16.gmra.mrb[4].mxu0 %v164_v35  ;;  %706 = vmatprep.mubr.bf16.mxu1 %v176_v38 }
  0x86   :  { %707 = vmatmul.mubr.bf16.gmra.mrb[4].mxu1 %v180_v39 }
 0x14d   :  { %v696_v41 = vpop.f32.mrb[0].mxu0 }
 0x14e   :  { %v296_v42 = vadd.f32 %v696_v41, %v901_v40  ;;  %v287_v43 = vpop.f32.mrb[1].mxu0 }
 0x14f   :  { %v288_v44 = vadd.f32 %v901_v40, %v287_v43  ;;  %v697_v45 = vpop.f32.mrb[2].mxu0 }
 0x150   :  { %751 = vtanh.f32 %v296_v42  ;;  %v299_v46 = vadd.f32 %v697_v45, %v901_v40  ;;  %v290_v47 = vpop.f32.mrb[3].mxu0 }
 0x151   :  { %v704_v48 = vpop.f32.mrb[0].mxu1  ;;  %753 = vtanh.f32 %v288_v44  ;;  %v291_v49 = vadd.f32 %v901_v40, %v290_v47 }
 0x152   :  { %v319_v50 = vpop.f32.mrb[1].mxu1  ;;  %755 = vtanh.f32 %v299_v46  ;;  %v328_v8 = vadd.f32 %v704_v48, %v901_v40 }
 0x153   :  { %v320_v51 = vadd.f32 %v901_v40, %v319_v50  ;;  %v705_v52 = vpop.f32.mrb[2].mxu1  ;;  %757 = vtanh.f32 %v291_v49 }
 0x154   :  { %v322_v53 = vpop.f32.mrb[3].mxu1  ;;  %v331_v14 = vadd.f32 %v705_v52, %v901_v40 }
 0x155   :  { %v323_v54 = vadd.f32 %v901_v40, %v322_v53  ;;  %759 = vtanh.f32 %v320_v51  ;;  %v700_v55 = vpop.f32.mrb[4].mxu0 }
 0x156   :  { %v312_v56 = vadd.f32 %v700_v55, %v901_v40  ;;  %v303_v57 = vpop.f32.mrb[5].mxu0 }
 0x157   :  { %761 = vtanh.f32 %v323_v54  ;;  %v701_v58 = vpop.f32.mrb[6].mxu0  ;;  %v304_v63 = vadd.f32 %v901_v40, %v303_v57 }
 0x158   :  { %763 = vtanh.f32 %v312_v56  ;;  %v315_v59 = vadd.f32 %v701_v58, %v901_v40  ;;  %v306_v60 = vpop.f32.mrb[7].mxu0  ;;  %v454_v58 = vlaneseq }
 0x159   :  { %v708_v62 = vpop.f32.mrb[4].mxu1  ;;  %v307_v6 = vadd.f32 %v901_v40, %v306_v60 }
 0x15a   :  { %v335_v0 = vpop.f32.mrb[5].mxu1  ;;  %v752_v1 = vpop.eup %751  ;;  %765 = vtanh.f32 %v315_v59  ;;  %v344_v24 = vadd.f32 %v708_v62, %v901_v40  ;;  %v956_v60 = vand.u32 127, %v454_v58 }
 0x15b   :  { %v709_v2 = vpop.f32.mrb[6].mxu1  ;;  %v754_v3 = vpop.eup %753  ;;  %v375_v4 = vmul.f32 %v752_v1, %v914_v61  ;;  %767 = vtanh.f32 %v304_v63  ;;  %v336_v13 = vadd.f32 %v901_v40, %v335_v0  ;;  %v959_v0 = vshrl.u32 %v454_v58, 7 }
 0x15c   :  { %v338_v5 = vpop.f32.mrb[7].mxu1  ;;  %v756_v7 = vpop.eup %755  ;;  %v373_v10 = vmul.f32 %v754_v3, %v914_v61  ;;  %769 = vtanh.f32 %v307_v6  ;;  %v347_v30 = vadd.f32 %v709_v2, %v901_v40  ;;  %v460_v62 = vadd.s32 4294967288, %v956_v60 }
 0x15d   :  { %v396_v9 = vsel %vm389_vm1, %v375_v4, 0.0  ;;  %v758_v11 = vpop.eup %757  ;;  %771 = vtanh.f32 %v328_v8  ;;  %v376_v18 = vmul.f32 %v756_v7, %v914_v61  ;;  %v339_v22 = vadd.f32 %v901_v40, %v338_v5 }
 0x15e   :  { %397 = vadd.xlane.f32.xlu0 %v396_v9  ;;  %v390_v17 = vsel %vm389_vm1, %v373_v10, 0.0  ;;  %v374_v21 = vmul.f32 %v758_v11, %v914_v61  ;;  %773 = vtanh.f32 %v336_v13  ;;  %v463_v2 = vsub.s32 %v460_v62, %v959_v0 }
 0x15f   :  { %v760_v12 = vpop.eup %759  ;;  %775 = vtanh.f32 %v331_v14  ;;  %v399_v25 = vsel %vm389_vm1, %v376_v18, 0.0  ;;  %v458_v4 = vsub.s32 %v956_v60, %v959_v0  ;;  %v481_v6 = vadd.s32 4294967264, %v956_v60 }
 0x160   :  { %v381_v15 = vmul.f32 %v760_v12, %v914_v61  ;;  %v393_v28 = vsel %vm389_vm1, %v374_v21, 0.0  ;;  %777 = vtanh.f32 %v339_v22  ;;  %v474_v7 = vadd.s32 4294967272, %v956_v60 }
 0x161   :  { %v762_v16 = vpop.eup %761  ;;  %779 = vtanh.f32 %v344_v24  ;;  %v509_v12 = vadd.s32 4294967232, %v956_v60  ;;  %v495_v13 = vadd.s32 4294967248, %v956_v60  ;;  %v516_v21 = vadd.s32 4294967224, %v956_v60 }
 0x162   :  { %v764_v19 = vpop.eup %763  ;;  %391 = vadd.xlane.f32.xlu0 %v390_v17  ;;  %v414_v20 = vsel %vm389_vm1, %v381_v15, 0.0  ;;  %v382_v26 = vmul.f32 %v762_v16, %v914_v61  ;;  %781 = vtanh.f32 %v347_v30  ;;  %v488_v15 = vadd.s32 4294967256, %v956_v60 }
 0x163   :  { %415 = vadd.xlane.f32.xlu1 %v414_v20  ;;  %v379_v23 = vmul.f32 %v764_v19, %v914_v61  ;;  %v484_v16 = vsub.s32 %v481_v6, %v959_v0  ;;  %v477_v17 = vsub.s32 %v474_v7, %v959_v0  ;;  %v502_v19 = vadd.s32 4294967240, %v956_v60 }
 0x164   :  { %v766_v27 = vpop.eup %765  ;;  %v417_v32 = vsel %vm389_vm1, %v382_v26, 0.0  ;;  %v498_v24 = vsub.s32 %v495_v13, %v959_v0  ;;  %v491_v26 = vsub.s32 %v488_v15, %v959_v0  ;;  %v530_v30 = vadd.s32 4294967208, %v956_v60 }
 0x165   :  { %v768_v29 = vpop.eup %767  ;;  %v408_v31 = vsel %vm389_vm1, %v379_v23, 0.0  ;;  %v380_v33 = vmul.f32 %v766_v27, %v914_v61  ;;  %v512_v23 = vsub.s32 %v509_v12, %v959_v0  ;;  %v523_v27 = vadd.s32 4294967216, %v956_v60 }
 0x166   :  { %400 = vadd.xlane.f32.xlu0 %v399_v25  ;;  %v770_v34 = vpop.eup %769  ;;  %v377_v35 = vmul.f32 %v768_v29, %v914_v61  ;;  %v582_v15 = vand.u32 1, %v956_v60 }
 0x167   :  { %394 = vadd.xlane.f32.xlu1 %v393_v28  ;;  %v772_v36 = vpop.eup %771  ;;  %v411_v38 = vsel %vm389_vm1, %v380_v33, 0.0  ;;  %v378_v39 = vmul.f32 %v770_v34, %v914_v61  ;;  %v537_v33 = vadd.s32 4294967200, %v956_v60  ;;  %v519_v34 = vsub.s32 %v516_v21, %v959_v0 }
 0x168   :  { %v774_v37 = vpop.eup %773  ;;  %v402_v41 = vsel %vm389_vm1, %v377_v35, 0.0  ;;  %v383_v42 = vmul.f32 %v772_v36, %v914_v61 }
 0x169   :  { %v776_v40 = vpop.eup %775  ;;  %v385_v43 = vmul.f32 %v774_v37, %v914_v61  ;;  %v405_v44 = vsel %vm389_vm1, %v378_v39, 0.0 }
 0x16a   :  { %418 = vadd.xlane.f32.xlu0 %v417_v32  ;;  %v384_v45 = vmul.f32 %v776_v40, %v914_v61  ;;  %v778_v46 = vpop.eup %777  ;;  %v420_v47 = vsel %vm389_vm1, %v383_v42, 0.0  ;;  %v505_v32 = vsub.s32 %v502_v19, %v959_v0  ;;  %v544_v40 = vadd.s32 4294967192, %v956_v60 }
 0x16b   :  { %409 = vadd.xlane.f32.xlu1 %v408_v31  ;;  %v780_v48 = vpop.eup %779  ;;  %v426_v49 = vsel %vm389_vm1, %v385_v43, 0.0  ;;  %v386_v51 = vmul.f32 %v778_v46, %v914_v61  ;;  %v533_v43 = vsub.s32 %v530_v30, %v959_v0 }
 0x16c   :  { %v423_v50 = vsel %vm389_vm1, %v384_v45, 0.0  ;;  %v782_v52 = vpop.eup %781  ;;  %v387_v53 = vmul.f32 %v780_v48, %v914_v61 }
 0x16d   :  { %v429_v54 = vsel %vm389_vm1, %v386_v51, 0.0  ;;  %v388_v55 = vmul.f32 %v782_v52, %v914_v61  ;;  %v467_v61 = vadd.s32 4294967280, %v956_v60 }
 0x16e   :  { %412 = vadd.xlane.f32.xlu0 %v411_v38  ;;  %v432_v56 = vsel %vm389_vm1, %v387_v53, 0.0  ;;  %v526_v38 = vsub.s32 %v523_v27, %v959_v0 }
 0x16f   :  { %403 = vadd.xlane.f32.xlu1 %v402_v41  ;;  %v435_v57 = vsel %vm389_vm1, %v388_v55, 0.0  ;;  %v470_v9 = vsub.s32 %v467_v61, %v959_v0  ;;  %v558_v55 = vadd.s32 4294967176, %v956_v60 }
 0x172   :  { %406 = vadd.xlane.f32.xlu0 %v405_v44  ;;  %v551_v44 = vadd.s32 4294967184, %v956_v60 }
 0x173   :  { %421 = vadd.xlane.f32.xlu1 %v420_v47  ;;  %v540_v47 = vsub.s32 %v537_v33, %v959_v0 }
 0x174   :  { %v554_v58 = vsub.s32 %v551_v44, %v959_v0 }
 0x176   :  { %424 = vadd.xlane.f32.xlu0 %v423_v50 }
 0x177   :  { %427 = vadd.xlane.f32.xlu1 %v426_v49 }
 0x17a   :  { %430 = vadd.xlane.f32.xlu0 %v429_v54  ;;  %v547_v54 = vsub.s32 %v544_v40, %v959_v0 }
 0x17b   :  { %433 = vadd.xlane.f32.xlu1 %v432_v56 }
 0x17e   :  { %436 = vadd.xlane.f32.xlu0 %v435_v57 }
 0x1eb   :  { %v398_v59 = vpop.xlane.xlu0 %397 }
 0x1ec   :  { %v471_v20 = vrot.slane %v398_v59, %v470_v9 }
 0x1ef   :  { %v392_v63 = vpop.xlane.xlu0 %391 }
 0x1f0   :  { %v416_v1 = vpop.xlane.xlu1 %415  ;;  %v459_v11 = vrot.slane %v392_v63, %v458_v4 }
 0x1f1   :  { %v513_v48 = vrot.slane %v416_v1, %v512_v23 }
 0x1f3   :  { %v401_v3 = vpop.xlane.xlu0 %400 }
 0x1f4   :  { %v395_v5 = vpop.xlane.xlu1 %394  ;;  %v478_v31 = vrot.slane %v401_v3, %v477_v17 }
 0x1f5   :  { %v464_v8 = vrot.slane %v395_v5, %v463_v2  ;;  %v561_v5 = vsub.s32 %v558_v55, %v959_v0 }
 0x1f7   :  { %v419_v10 = vpop.xlane.xlu0 %418  ;;  %v466_v18 = vsel %vm465_vm2, %v464_v8, %v459_v11  ;;  %v574_v11 = vmul.u32 128, %v959_v0  ;;  %vm1006_vm2 = vcmp.eq.s32.totalorder %v582_v15, %v959_v0 }
 0x1f8   :  { %v410_v14 = vpop.xlane.xlu1 %409  ;;  %v473_v28 = vsel %vm472_vm3, %v471_v20, %v466_v18  ;;  %v520_v51 = vrot.slane %v419_v10, %v519_v34  ;;  %vm596_vm3 = vcmask 1041408  }
 0x1f9   :  { %v480_v36 = vsel %vm479_vm4, %v478_v31, %v473_v28  ;;  %v499_v41 = vrot.slane %v410_v14, %v498_v24  ;;  %v575_v14 = vadd.s32 %v574_v11, %v956_v60 }
 0x1fb   :  { %v413_v22 = vpop.xlane.xlu0 %412  ;;  %vm576_vm1 = vcmp.lt.s32.totalorder %v575_v14, 16 }
 0x1fc   :  { %v404_v25 = vpop.xlane.xlu1 %403  ;;  %v506_v45 = vrot.slane %v413_v22, %v505_v32 }
 0x1fd   :  { %v485_v29 = vrot.slane %v404_v25, %v484_v16  ;;  %v593_v16 = vsub.s32 0, %v959_v0 }
 0x1ff   :  { %v407_v35 = vpop.xlane.xlu0 %406  ;;  %v487_v42 = vsel %vm486_vm5, %v485_v29, %v480_v36 }
 0x200   :  { %v492_v37 = vrot.slane %v407_v35, %v491_v26  ;;  %v422_v39 = vpop.xlane.xlu1 %421 }
 0x201   :  { %v527_v57 = vrot.slane %v422_v39, %v526_v38 }
 0x202   :  { %v494_v46 = vsel %vm493_vm6, %v492_v37, %v487_v42 }
 0x203   :  { %v501_v49 = vsel %vm500_vm7, %v499_v41, %v494_v46  ;;  %v425_v50 = vpop.xlane.xlu0 %424 }
 0x204   :  { %v508_v52 = vsel %vm507_vm8, %v506_v45, %v501_v49  ;;  %v428_v53 = vpop.xlane.xlu1 %427  ;;  %v534_v62 = vrot.slane %v425_v50, %v533_v43 }
 0x205   :  { %v515_v56 = vsel %vm514_vm9, %v513_v48, %v508_v52  ;;  %v541_v1 = vrot.slane %v428_v53, %v540_v47 }
 0x206   :  { %v522_v59 = vsel %vm521_vm10, %v520_v51, %v515_v56 }
 0x207   :  { %v529_v63 = vsel %vm528_vm11, %v527_v57, %v522_v59  ;;  %v431_v2 = vpop.xlane.xlu0 %430 }
 0x208   :  { %v536_v61 = vsel %vm535_vm12, %v534_v62, %v529_v63  ;;  %v548_v3 = vrot.slane %v431_v2, %v547_v54  ;;  %v434_v4 = vpop.xlane.xlu1 %433 }
 0x209   :  { %v543_v6 = vsel %vm542_vm13, %v541_v1, %v536_v61  ;;  %v555_v7 = vrot.slane %v434_v4, %v554_v58 }
 0x20a   :  { %v550_v8 = vsel %vm549_vm14, %v548_v3, %v543_v6 }
 0x20b   :  { %v437_v9 = vpop.xlane.xlu0 %436  ;;  %v557_v12 = vsel %vm556_vm15, %v555_v7, %v550_v8 }
 0x20c   :  { %v562_v10 = vrot.slane %v437_v9, %v561_v5 }
 0x20e   :  { %v564_v13 = vsel %vm563_vm0, %v562_v10, %v557_v12 }
 0x20f   :  { %566 = vst [vmem:[%s1031_s5] sm:$0x1] %v564_v13 }
 0x216   :  { %v571_v17 = vld [vmem:[%s1031_s5] sm:$0x1] }
 0x217   :  { %v577_v18 = vsel %vm576_vm1, %v571_v17, -3.4028235e+38 }
 0x218   :  { %v594_v20 = vrot.slane %v577_v18, %v593_v16 }
 0x21a   :  { %v595_v21 = vsel %vm1006_vm2, %v594_v20, -3.4028235e+38 }
 0x21b   :  { %v597_v60 = vsel %vm596_vm3, %v595_v21, -inf }
 0x21c   :  { %598 = vmax.xlane.f32.xlu1 %v597_v60 }
 0x2a9   :  { %v599_v22 = vpop.xlane.xlu1 %598 }
 0x2aa   :  { %v600_v23 = vsel %vm1006_vm2, %v599_v22, 0.0 }
 0x2ab   :  { %v601_v24 = vsel %vm596_vm3, %v600_v23, 0.0 }
 0x2ac   :  { %v602_v25 = vrot.slane %v601_v24, 4 }
 0x2ae   :  { %v603_v26 = vadd.f32 %v602_v25, %v601_v24 }
 0x2b0   :  { %v604_v0 = vrot.slane %v603_v26, 2 }
 0x2b2   :  { %v605_v27 = vadd.f32 %v604_v0, %v603_v26 }
 0x2b4   :  { %v606_v28 = vrot.slane %v605_v27, 1 }
 0x2b6   :  { %v607_v29 = vadd.f32 %v606_v28, %v605_v27 }
 0x2b8   :  { %v608_v30 = vsub.f32 %v571_v17, %v607_v29 }
 0x2ba   :  { %v609_v31 = vmul.f32 1.442695, %v608_v30 }
 0x2bc   :  { %783 = vpow2.f32 %v609_v31 }
 0x2c6   :  { %v784_v32 = vpop.eup %783 }
 0x2c7   :  { %v611_v33 = vsel %vm576_vm1, %v784_v32, 0.0 }
 0x2c8   :  { %v616_v34 = vrot.slane %v611_v33, %v593_v16 }
 0x2ca   :  { %v617_v35 = vsel %vm1006_vm2, %v616_v34, 0.0 }
 0x2cb   :  { %v618_v36 = vsel %vm596_vm3, %v617_v35, 0.0 }
 0x2cc   :  { %619 = vadd.xlane.f32.xlu0 %v618_v36 }
 0x359   :  { %v620_v37 = vpop.xlane.xlu0 %619 }
 0x35a   :  { %v621_v38 = vsel %vm1006_vm2, %v620_v37, 0.0 }
 0x35b   :  { %v622_v39 = vsel %vm596_vm3, %v621_v38, 0.0 }
 0x35c   :  { %v623_v40 = vrot.slane %v622_v39, 4 }
 0x35e   :  { %v624_v41 = vadd.f32 %v623_v40, %v622_v39 }
 0x360   :  { %v625_v42 = vrot.slane %v624_v41, 2 }
 0x362   :  { %v626_v43 = vadd.f32 %v625_v42, %v624_v41 }
 0x364   :  { %v627_v44 = vrot.slane %v626_v43, 1 }
 0x366   :  { %v628_v45 = vadd.f32 %v627_v44, %v626_v43 }
 0x368   :  { %785 = vrcp.f32 %v628_v45 }
 0x372   :  { %v786_v46 = vpop.eup %785 }
 0x373   :  { %v630_v47 = vmul.f32 %v786_v46, %v611_v33 }
 0x375   :  { %631 = vst [vmem:[%s1031_s5] sm:$0x1] %v630_v47 }

</bundles_post_ra>
